<compile_context>
chip_gen: v5e
topology: v5e:2x2
jax: 0.10.0
libtpu: 0.0.40
codegen_flags: <defaults>
</compile_context>

<pallas_src>
import functools

import jax
import jax.numpy as jnp
from jax import lax
from jax.experimental import pallas as pl
from jax.experimental.pallas import tpu as pltpu

PAD_ID = 1  # UniXcoder / RoBERTa pad token id


# ----------------------------------------------------------------------------
# Path B: HBM row-gather (realistic large vocab; table never VMEM-resident)
# ----------------------------------------------------------------------------
def _embed_kernel_hbm(ids_smem, ids_blk_ref, table_hbm, tok_ref, sent_ref, sem,
                      *, pad_id):
    """One grid step handles a block of Bt batch rows (Bt*S tokens).

    ids_smem    : SMEM (B, S) int32   scalar-prefetched ids (DMA addressing)
    ids_blk_ref : VMEM (Bt, S) int32  ids block (vectorized mask compute)
    table_hbm   : HBM  (V, D)         embedding table, stays in HBM
    tok_ref     : VMEM (Bt, S, D)     token-embedding output block (DMA target)
    sent_ref    : VMEM (Bt, D) f32    pooled sentence-embedding output block
    sem         : DMA semaphore (1,)  shared by every row copy of this block
    """
    blk = pl.program_id(0)
    Bt, S, D = tok_ref.shape
    T = Bt * S
    base = blk * Bt

    def _start(t, carry):
        b = t // S
        s = t % S
        tid = ids_smem[base + b, s]
        # Gather the row straight into the output block: no intermediate scratch.
        pltpu.make_async_copy(table_hbm.at[tid], tok_ref.at[b, s], sem.at[0]).start()
        return carry

    def _wait(t, carry):
        # All row copies have identical size, so draining the shared semaphore
        # once per issued copy is exact.
        pltpu.make_async_copy(table_hbm.at[0], tok_ref.at[0, 0], sem.at[0]).wait()
        return carry

    unroll = min(T, 8)
    lax.fori_loop(0, T, _start, 0, unroll=unroll)   # all DMAs overlap in flight
    lax.fori_loop(0, T, _wait, 0, unroll=unroll)    # drain completions

    # Mask-aware mean pool, accumulated in f32 chunk-by-chunk over S so the f32
    # temporaries stay bounded to one (Bt, <=128, D) slab.
    mask_f32 = (ids_blk_ref[...] != pad_id).astype(jnp.float32)        # (Bt, S)
    cs = 128 if (S > 128 and S % 128 == 0) else S
    acc = jnp.zeros((Bt, D), jnp.float32)
    for c in range(S // cs):                                           # static, small
        sub = tok_ref[:, c * cs:(c + 1) * cs, :].astype(jnp.float32)   # (Bt, cs, D)
        m = mask_f32[:, c * cs:(c + 1) * cs]                           # (Bt, cs)
        acc = acc + jnp.sum(sub * m[:, :, None], axis=1)
    cnt = jnp.maximum(jnp.sum(mask_f32, axis=1, keepdims=True), 1.0)   # (Bt, 1)
    sent_ref[...] = acc / cnt                                          # exact divide


# ----------------------------------------------------------------------------
# Path A: small-vocab fast path (table VMEM-resident, one-hot MXU gather)
# ----------------------------------------------------------------------------
def _embed_kernel_resident(ids_blk_ref, table_ref, tok_ref, sent_ref, *, pad_id):
    Bt, S, D = tok_ref.shape
    V = table_ref.shape[0]
    ids = ids_blk_ref[...]                                             # (Bt, S)
    mask_f32 = (ids != pad_id).astype(jnp.float32)
    table = table_ref[...]                                             # (V, D)

    cs = 128 if (S > 128 and S % 128 == 0) else S
    acc = jnp.zeros((Bt, D), jnp.float32)
    for c in range(S // cs):                                           # static, small
        ids_c = ids[:, c * cs:(c + 1) * cs]                            # (Bt, cs)
        iota_v = lax.broadcasted_iota(jnp.int32, (Bt, cs, V), 2)
        onehot = (ids_c[:, :, None] == iota_v).astype(table.dtype)     # (Bt, cs, V)
        g = jnp.dot(onehot.reshape(Bt * cs, V), table,
                    preferred_element_type=jnp.float32).reshape(Bt, cs, D)
        tok_ref[:, c * cs:(c + 1) * cs, :] = g.astype(tok_ref.dtype)
        acc = acc + jnp.sum(g * mask_f32[:, c * cs:(c + 1) * cs, None], axis=1)
    cnt = jnp.maximum(jnp.sum(mask_f32, axis=1, keepdims=True), 1.0)
    sent_ref[...] = acc / cnt                                          # exact divide


# ----------------------------------------------------------------------------
# Wrapper
# ----------------------------------------------------------------------------
def _pick_batch_block(B, S, D, itemsize, budget_bytes=6 << 20):
    """Largest legal batch block whose (bt, S, D) tok tile fits the budget.

    Legality ((8,128) rule on the (bt, D)/(bt, S) blocks): bt == B, or
    bt % 8 == 0 and bt divides B.  For B >= 16 we force >= 2 grid blocks so the
    'parallel' axis can shard across v7x's two TensorCores and cross-step
    pipelining exists.  The 6 MiB default keeps 2x double-buffered tiles well
    inside v7x's 32 MiB scoped VMEM; raise it (8-16 MiB) on v6e's 128 MiB.
    """
    row_bytes = S * D * itemsize
    cands = [bt for bt in range(8, B + 1, 8) if B % bt == 0]
    if B not in cands:
        cands.append(B)
    if B >= 16:
        multi = [c for c in cands if c <= B // 2]
        if multi:
            cands = multi
    fitting = [c for c in cands if c * row_bytes <= budget_bytes]
    if fitting:
        return max(fitting)
    return min(cands)   # smallest legal block; may exceed budget only for huge S*D


def embedding_layer_forward(vocab_ids, embedding_table, *, pad_id=PAD_ID,
                            force_hbm_gather=False, block_budget_bytes=6 << 20):
    """vocab_ids: (B, S) int; embedding_table: (V, D) f32 or bf16.

    Returns (token_embeddings (B, S, D) in table dtype, sentence_embeddings (B, D) f32).
    Dropout in the PyTorch module is never active in this frozen/eval forward,
    so it is the identity here.
    """
    B, S = vocab_ids.shape
    V, D = embedding_table.shape
    ids = vocab_ids.astype(jnp.int32)

    bt = _pick_batch_block(B, S, D, embedding_table.dtype.itemsize,
                           budget_bytes=block_budget_bytes)
    grid = (B // bt,)
    out_shape = (jax.ShapeDtypeStruct((B, S, D), embedding_table.dtype),
                 jax.ShapeDtypeStruct((B, D), jnp.float32))

    table_bytes = V * D * embedding_table.dtype.itemsize
    use_resident = (not force_hbm_gather) and (V <= 1024) and (table_bytes <= (1 << 20))

    if use_resident:
        # Small table: keep it VMEM-resident, gather via one-hot MXU matmul.
        fn = pl.pallas_call(
            functools.partial(_embed_kernel_resident, pad_id=pad_id),
            out_shape=out_shape,
            grid_spec=pltpu.PrefetchScalarGridSpec(
                num_scalar_prefetch=0,
                grid=grid,
                in_specs=[
                    pl.BlockSpec((bt, S), lambda i: (i, 0)),
                    pl.BlockSpec((V, D), lambda i: (0, 0)),     # resident, re-used
                ],
                out_specs=[
                    pl.BlockSpec((bt, S, D), lambda i: (i, 0, 0)),
                    pl.BlockSpec((bt, D), lambda i: (i, 0)),
                ],
            ),
            compiler_params=pltpu.CompilerParams(
                dimension_semantics=("parallel",)),
        )
        return fn(ids, embedding_table)

    # Large table: HBM row-gather straight into the output block.
    fn = pl.pallas_call(
        functools.partial(_embed_kernel_hbm, pad_id=pad_id),
        out_shape=out_shape,
        grid_spec=pltpu.PrefetchScalarGridSpec(
            num_scalar_prefetch=1,                      # ids -> SMEM for DMA addressing
            grid=grid,
            in_specs=[
                pl.BlockSpec((bt, S), lambda i, ids_sm: (i, 0)),   # ids (mask compute)
                pl.BlockSpec(memory_space=pl.ANY),                 # table stays in HBM
            ],
            out_specs=[
                pl.BlockSpec((bt, S, D), lambda i, ids_sm: (i, 0, 0)),
                pl.BlockSpec((bt, D), lambda i, ids_sm: (i, 0)),
            ],
            scratch_shapes=[
                pltpu.SemaphoreType.DMA((1,)),          # one shared gather semaphore
            ],
        ),
        compiler_params=pltpu.CompilerParams(
            dimension_semantics=("parallel",)),         # batch blocks across TCs (v7x)
    )
    return fn(ids, ids, embedding_table)


if __name__ == "__main__":
    key = jax.random.PRNGKey(0)
    B, S, V, D = 2, 8, 256, 128

    k_ids, k_tab = jax.random.split(key)
    # deterministic synthetic "UniXcoder" embedding table
    table = jax.random.normal(k_tab, (V, D), dtype=jnp.float32) * 0.02
    # token ids, with some pad tokens sprinkled in
    ids = jax.random.randint(k_ids, (B, S), minval=2, maxval=V, dtype=jnp.int32)
    ids = ids.at[0, S - 2:].set(PAD_ID).at[1, S - 1:].set(PAD_ID)

    # plain-JAX reference
    tok_ref = jnp.take(table, ids, axis=0)
    mask = (ids != PAD_ID).astype(jnp.float32)[..., None]
    sent_ref = (tok_ref * mask).sum(axis=1) / jnp.maximum(mask.sum(axis=1), 1.0)

    # 1) small-vocab fast path (resident table, one-hot MXU gather)
    tok_a, sent_a = embedding_layer_forward(ids, table)
    jax.block_until_ready((tok_a, sent_a))
    assert tok_a.shape == (B, S, D) and sent_a.shape == (B, D)
    assert jnp.allclose(tok_a, tok_ref, atol=1e-5)
    assert jnp.allclose(sent_a, sent_ref, atol=1e-5)

    # 2) HBM row-gather path (what a real 50k x 768 table uses), forced at demo scale
    tok_b, sent_b = embedding_layer_forward(ids, table, force_hbm_gather=True)
    jax.block_until_ready((tok_b, sent_b))
    assert jnp.allclose(tok_b, tok_ref, atol=1e-6)
    assert jnp.allclose(sent_b, sent_ref, atol=1e-5)

    # 3) bf16 streaming variant of the HBM path (half the gathered HBM bytes)
    table_bf16 = table.astype(jnp.bfloat16)
    tok_c, sent_c = embedding_layer_forward(ids, table_bf16, force_hbm_gather=True)
    jax.block_until_ready((tok_c, sent_c))
    tok_ref_bf = jnp.take(table_bf16, ids, axis=0)
    sent_ref_bf = (tok_ref_bf.astype(jnp.float32) * mask).sum(axis=1) / \
        jnp.maximum(mask.sum(axis=1), 1.0)
    assert tok_c.dtype == jnp.bfloat16 and sent_c.dtype == jnp.float32
    assert jnp.allclose(tok_c.astype(jnp.float32), tok_ref_bf.astype(jnp.float32),
                        atol=1e-6)
    assert jnp.allclose(sent_c, sent_ref_bf, atol=1e-4)

    print("KERNEL_OK")
</pallas_src>

<mosaic_0001>
module attributes {stable_mosaic.version = 11 : i64} {
  func.func @_embed_kernel_resident(%arg0: i32, %arg1: memref<2x8xi32, #tpu.memory_space<vmem>>, %arg2: memref<256x128xf32, #tpu.memory_space<vmem>>, %arg3: memref<2x8x128xf32, #tpu.memory_space<vmem>>, %arg4: memref<2x128xf32, #tpu.memory_space<vmem>>) attributes {dimension_semantics = [#tpu.dimension_semantics<parallel>], iteration_bounds = array<i64: 1>, scalar_prefetch = 0 : i64, scratch_operands = 0 : i64, tpu.core_type = #tpu.core_type<tc>, window_params = [{transform_indices = @transform_0, window_bounds = array<i64: 2, 8>}, {pipeline_mode = #tpu.pipeline_mode<synchronous>, transform_indices = @transform_1, window_bounds = array<i64: 256, 128>}, {transform_indices = @transform_2, window_bounds = array<i64: 2, 8, 128>}, {transform_indices = @transform_3, window_bounds = array<i64: 2, 128>}]} {
    %c0 = arith.constant 0 : index
    %c0_0 = arith.constant 0 : index
    %0 = vector.load %arg1[%c0, %c0_0] : memref<2x8xi32, #tpu.memory_space<vmem>>, vector<2x8xi32>
    %c1_i32 = arith.constant 1 : i32
    %1 = vector.broadcast %c1_i32 : i32 to vector<2x8xi32>
    %2 = arith.cmpi ne, %0, %1 : vector<2x8xi32>
    %3 = arith.extui %2 : vector<2x8xi1> to vector<2x8xi32>
    %4 = arith.sitofp %3 : vector<2x8xi32> to vector<2x8xf32>
    %c0_1 = arith.constant 0 : index
    %c0_2 = arith.constant 0 : index
    %5 = vector.load %arg2[%c0_1, %c0_2] : memref<256x128xf32, #tpu.memory_space<vmem>>, vector<256x128xf32>
    %cst = arith.constant 0.000000e+00 : f32
    %6 = vector.broadcast %cst : f32 to vector<2x128xf32>
    %7 = tpu.iota {dimensions = array<i32: 2>} : vector<2x8x256xi32>
    %8 = vector.shape_cast %0 : vector<2x8xi32> to vector<2x8x1xi32>
    %9 = vector.broadcast %8 : vector<2x8x1xi32> to vector<2x8x256xi32>
    %10 = arith.cmpi eq, %9, %7 : vector<2x8x256xi32>
    %11 = arith.extui %10 : vector<2x8x256xi1> to vector<2x8x256xi32>
    %12 = arith.sitofp %11 : vector<2x8x256xi32> to vector<2x8x256xf32>
    %13 = vector.shape_cast %12 : vector<2x8x256xf32> to vector<16x256xf32>
    %cst_3 = arith.constant dense<0.000000e+00> : vector<16x128xf32>
    %14 = tpu.matmul %13, %5, %cst_3 {dimension_numbers = #tpu.dot_dimension_numbers<[1], [0], [0], [1], [0, 0, 1, 1], [], []>} : vector<16x256xf32>, vector<256x128xf32>, vector<16x128xf32> -> vector<16x128xf32>
    %15 = vector.shape_cast %14 : vector<16x128xf32> to vector<2x8x128xf32>
    %c0_4 = arith.constant 0 : index
    %c0_5 = arith.constant 0 : index
    %c0_6 = arith.constant 0 : index
    %16 = vector.load %arg3[%c0_4, %c0_5, %c0_6] : memref<2x8x128xf32, #tpu.memory_space<vmem>>, vector<2x8x128xf32>
    tpu.vector_store %arg3[%c0_4, %c0_5, %c0_6], %15 {strides = array<i32>} : memref<2x8x128xf32, #tpu.memory_space<vmem>>, vector<2x8x128xf32>,
    %17 = vector.shape_cast %4 : vector<2x8xf32> to vector<2x8x1xf32>
    %18 = vector.broadcast %17 : vector<2x8x1xf32> to vector<2x8x128xf32>
    %19 = arith.mulf %15, %18 : vector<2x8x128xf32>
    %cst_7 = arith.constant dense<0.000000e+00> : vector<2x128xf32>
    %20 = vector.multi_reduction <add>, %19, %cst_7 [1] : vector<2x8x128xf32> to vector<2x128xf32>
    %21 = arith.addf %6, %20 : vector<2x128xf32>
    %cst_8 = arith.constant dense<0.000000e+00> : vector<2xf32>
    %22 = vector.multi_reduction <add>, %4, %cst_8 [1] : vector<2x8xf32> to vector<2xf32>
    %23 = vector.shape_cast %22 : vector<2xf32> to vector<2x1xf32>
    %cst_9 = arith.constant 1.000000e+00 : f32
    %24 = vector.broadcast %cst_9 : f32 to vector<2x1xf32>
    %25 = arith.maximumf %23, %24 : vector<2x1xf32>
    %26 = vector.broadcast %25 : vector<2x1xf32> to vector<2x128xf32>
    %27 = arith.divf %21, %26 : vector<2x128xf32>
    %c0_10 = arith.constant 0 : index
    %c0_11 = arith.constant 0 : index
    %28 = vector.load %arg4[%c0_10, %c0_11] : memref<2x128xf32, #tpu.memory_space<vmem>>, vector<2x128xf32>
    tpu.vector_store %arg4[%c0_10, %c0_11], %27 {strides = array<i32>} : memref<2x128xf32, #tpu.memory_space<vmem>>, vector<2x128xf32>,
    return
  }
  func.func @transform_0(%arg0: i32) -> (i32, i32) {
    %c0_i32 = arith.constant 0 : i32
    %c0_i32_0 = arith.constant 0 : i32
    return %arg0, %c0_i32 : i32, i32
  }
  func.func @transform_1(%arg0: i32) -> (i32, i32) {
    %c0_i32 = arith.constant 0 : i32
    %c0_i32_0 = arith.constant 0 : i32
    %c0_i32_1 = arith.constant 0 : i32
    return %c0_i32, %c0_i32_0 : i32, i32
  }
  func.func @transform_2(%arg0: i32) -> (i32, i32, i32) {
    %c0_i32 = arith.constant 0 : i32
    %c0_i32_0 = arith.constant 0 : i32
    %c0_i32_1 = arith.constant 0 : i32
    return %arg0, %c0_i32, %c0_i32_0 : i32, i32, i32
  }
  func.func @transform_3(%arg0: i32) -> (i32, i32) {
    %c0_i32 = arith.constant 0 : i32
    %c0_i32_0 = arith.constant 0 : i32
    return %arg0, %c0_i32 : i32, i32
  }
}

</mosaic_0001>

<bundles_post_ra>
// kernel: tpu_custom_call.1
= control target key start
LH: loop header
LB: loop body
LE: loop exit
PB: predicated region body
PF: predicated region fallthrough
CT: control target
= control target key end

     0   :  { %9 = vsyncpa [#allocation3], 0  ;;  %s506_s0 = inlined_call_operand.hbm [shape: s32[2,8], index: 0, kind: input, shape index: {}]   ;;  %s507_s1 = inlined_call_operand.hbm [shape: f32[256,128], index: 1, kind: input, shape index: {}]   ;;  %s508_s2 = inlined_call_operand.hbm [shape: f32[2,8,128], index: 2, kind: output, shape index: {0}]   ;;  %s509_s3 = inlined_call_operand.hbm [shape: f32[2,128], index: 3, kind: output, shape index: {1}]  }
   0x1   :  { %10 = vsyncpa [#allocation6], 0 }
   0x2   :  { %11 = vsyncpa [#allocation4], 0 }
   0x3   :  { %12 = vsyncpa [#allocation9], 0  ;;  %s18_s14 = sshll.u32 %s506_s0, 4  ;;  %s434_s15 = smov [#allocation2]   ;;  %s19_s14 = int_to_ptr.hbm [resolvable:$true] %s18_s14 }
   0x4   :  { %s20_s16 = sshll.u32 %s434_s15, 4  ;;  %s28_s19 = sshll.u32 %s507_s1, 4  ;;  %s21_s16 = int_to_ptr.vmem [resolvable:$true] %s20_s16  ;;  %s29_s19 = int_to_ptr.hbm [resolvable:$true] %s28_s19 }
   0x5   :  { %23 = dma.hbm_to_vmem [thread:$0]  %s19_s14, 32, %s21_s16, [#allocation3]  }
   0x6   :  { %s435_s20 = smov [#allocation5]   ;;  %s436_s22 = smov 128  }
   0x7   :  { %s30_s21 = sshll.u32 %s435_s20, 4  ;;  %s437_s23 = smov 8   ;;  %s31_s21 = int_to_ptr.vmem [resolvable:$true] %s30_s21 }
   0x8   :  { %36 = dma.hbm_to_vmem [thread:$0]  %s29_s19, 4096, %s31_s21, [#allocation6], %s436_s22, %s436_s22, %s437_s23  }
   0x9   :  { %426 = dma.done.wait [#allocation3], 32  }
   0xa   :  { %427 = vsyncadd [#allocation3], 4294967264 }
   0xb   :  { %428 = dma.done.wait [#allocation6], 4096  }
   0xc   :  { %429 = vsyncadd [#allocation6], 4294963200  ;;  %v81_v0 = vlaneseq  ;;  %v45_v2 = vld [vmem:[#allocation2] sm:$0x3]  ;;  %vm188_vm0 = vcmask 58368   ;;  %v63_v6 = vld [vmem:[#allocation5 + $0x70] sm:$0xff] }
   0xd   :  { %v64_v3 = vld [vmem:[#allocation5 + $0x78] sm:$0xff]  ;;  %v91_v5 = vperm.slane %v45_v2, 1  ;;  %v79_v7 = vld [vmem:[#allocation5 + $0xf0] sm:$0xff]  ;;  %vm46_vm1 = vcmp.ne.s32.totalorder %v45_v2, 1  ;;  %v62_v8 = vld [vmem:[#allocation5 + $0x68] sm:$0xff]  ;;  %v438_v9 = vmov 0.0  }
   0xe   :  { %v86_v1 = vshrl.u32 %v81_v0, 7  ;;  %v80_v4 = vld [vmem:[#allocation5 + $0xf8] sm:$0xff]  ;;  %279 = vmatpush.msra.mxu2 %v64_v3  ;;  %110 = vmatpush.msra.mxu0 %v64_v3  ;;  %v472_v10 = vsel %vm46_vm1, 1.0, %v438_v9  ;;  %v78_v11 = vld [vmem:[#allocation5 + $0xe8] sm:$0xff]  ;;  %v61_v13 = vld [vmem:[#allocation5 + $0x60] sm:$0xff]  ;;  %v84_v18 = vperm.slane %v45_v2, 0 }
   0xf   :  { %295 = vmatpush.msra.mxu3 %v80_v4  ;;  %133 = vmatpush.msra.mxu1 %v80_v4  ;;  %v189_v12 = vsel %vm188_vm0, %v472_v10, 0.0  ;;  %v77_v14 = vld [vmem:[#allocation5 + $0xe0] sm:$0xff]  ;;  %v60_v15 = vld [vmem:[#allocation5 + $0x58] sm:$0xff]  ;;  %v59_v17 = vld [vmem:[#allocation5 + $0x50] sm:$0xff]  ;;  %v158_v40 = vperm.slane %v472_v10, 0  ;;  %v165_v41 = vperm.slane %v472_v10, 1 }
  0x10   :  { %319 = vset.pattern.permute.xlu0 %v86_v1  ;;  %320 = vset.pattern.permute.xlu1 %v86_v1  ;;  %v76_v16 = vld [vmem:[#allocation5 + $0xd8] sm:$0xff]  ;;  %v75_v19 = vld [vmem:[#allocation5 + $0xd0] sm:$0xff]  ;;  %v58_v20 = vld [vmem:[#allocation5 + $0x48] sm:$0xff]  ;;  %v82_v43 = vand.u32 127, %v81_v0  ;;  %v439_v46 = vmov 1.0   ;;  %s440_s0 = smov [#allocation7]  }
  0x11   :  { %280 = vmatpush.msra.mxu2 %v63_v6  ;;  %296 = vmatpush.msra.mxu3 %v79_v7  ;;  %v74_v21 = vld [vmem:[#allocation5 + $0xc8] sm:$0xff]  ;;  %v57_v22 = vld [vmem:[#allocation5 + $0x40] sm:$0xff]  ;;  %v56_v24 = vld [vmem:[#allocation5 + $0x38] sm:$0xff]  ;;  %v321_v42 = vpack.i.bf16 %v158_v40, %v165_v41  ;;  %s238_s1 = sshll.u32 %s440_s0, 4  ;;  %s240_s26 = sshll.u32 %s508_s2, 4  ;;  %vm230_vm14 = vcmask 1041409   ;;  %s239_s1 = int_to_ptr.vmem [resolvable:$true] %s238_s1  ;;  %s241_s26 = int_to_ptr.hbm [resolvable:$true] %s240_s26 }
  0x12   :  { %111 = vmatpush.msra.mxu0 %v63_v6  ;;  %134 = vmatpush.msra.mxu1 %v79_v7  ;;  %v73_v23 = vld [vmem:[#allocation5 + $0xc0] sm:$0xff]  ;;  %v72_v25 = vld [vmem:[#allocation5 + $0xb8] sm:$0xff]  ;;  %v55_v26 = vld [vmem:[#allocation5 + $0x30] sm:$0xff]  ;;  %v83_v44 = vadd.s32 128, %v82_v43  ;;  %s441_s2 = smov [#allocation8]   ;;  %s254_s30 = sshll.u32 %s509_s3, 4  ;;  %s255_s30 = int_to_ptr.hbm [resolvable:$true] %s254_s30 }
  0x13   :  { %281 = vmatpush.msra.mxu2 %v62_v8  ;;  %297 = vmatpush.msra.mxu3 %v78_v11  ;;  %v71_v27 = vld [vmem:[#allocation5 + $0xb0] sm:$0xff]  ;;  %v54_v28 = vld [vmem:[#allocation5 + $0x28] sm:$0xff]  ;;  %v53_v30 = vld [vmem:[#allocation5 + $0x20] sm:$0xff]  ;;  %s252_s27 = sshll.u32 %s441_s2, 4  ;;  %s253_s27 = int_to_ptr.vmem [resolvable:$true] %s252_s27 }
  0x14   :  { %190 = vadd.xlane.f32.xlu1 %v189_v12  ;;  %112 = vmatpush.msra.mxu0 %v62_v8  ;;  %v70_v29 = vld [vmem:[#allocation5 + $0xa8] sm:$0xff]  ;;  %v69_v31 = vld [vmem:[#allocation5 + $0xa0] sm:$0xff]  ;;  %v52_v32 = vld [vmem:[#allocation5 + $0x18] sm:$0xff] }
  0x15   :  { %282 = vmatpush.msra.mxu2 %v61_v13  ;;  %298 = vmatpush.msra.mxu3 %v77_v14  ;;  %v68_v33 = vld [vmem:[#allocation5 + $0x98] sm:$0xff]  ;;  %v51_v34 = vld [vmem:[#allocation5 + $0x10] sm:$0xff]  ;;  %v50_v36 = vld [vmem:[#allocation5 + $0x8] sm:$0xff] }
  0x16   :  { %135 = vmatpush.msra.mxu1 %v78_v11  ;;  %113 = vmatpush.msra.mxu0 %v61_v13  ;;  %v67_v35 = vld [vmem:[#allocation5 + $0x90] sm:$0xff]  ;;  %v66_v37 = vld [vmem:[#allocation5 + $0x88] sm:$0xff]  ;;  %v49_v38 = vld [vmem:[#allocation5] sm:$0xff] }
  0x17   :  { %283 = vmatpush.msra.mxu2 %v60_v15  ;;  %299 = vmatpush.msra.mxu3 %v76_v16  ;;  %v65_v39 = vld [vmem:[#allocation5 + $0x80] sm:$0xff] }
  0x18   :  { %96 = vperm.xlu0 %319, %v91_v5   ;;  %136 = vmatpush.msra.mxu1 %v77_v14 }
  0x19   :  { %284 = vmatpush.msra.mxu2 %v59_v17  ;;  %114 = vmatpush.msra.mxu0 %v60_v15 }
  0x1a   :  { %300 = vmatpush.msra.mxu3 %v75_v19  ;;  %137 = vmatpush.msra.mxu1 %v76_v16 }
  0x1b   :  { %285 = vmatpush.msra.mxu2 %v58_v20  ;;  %115 = vmatpush.msra.mxu0 %v59_v17 }
  0x1c   :  { %301 = vmatpush.msra.mxu3 %v74_v21  ;;  %138 = vmatpush.msra.mxu1 %v75_v19 }
  0x1d   :  { %286 = vmatpush.msra.mxu2 %v57_v22  ;;  %116 = vmatpush.msra.mxu0 %v58_v20 }
  0x1e   :  { %302 = vmatpush.msra.mxu3 %v73_v23  ;;  %139 = vmatpush.msra.mxu1 %v74_v21 }
  0x1f   :  { %287 = vmatpush.msra.mxu2 %v56_v24  ;;  %117 = vmatpush.msra.mxu0 %v57_v22 }
  0x20   :  { %89 = vperm.xlu0 %319, %v84_v18   ;;  %303 = vmatpush.msra.mxu3 %v72_v25 }
  0x21   :  { %288 = vmatpush.msra.mxu2 %v55_v26  ;;  %140 = vmatpush.msra.mxu1 %v73_v23 }
  0x22   :  { %304 = vmatpush.msra.mxu3 %v71_v27  ;;  %118 = vmatpush.msra.mxu0 %v56_v24 }
  0x23   :  { %289 = vmatpush.msra.mxu2 %v54_v28  ;;  %141 = vmatpush.msra.mxu1 %v72_v25 }
  0x24   :  { %305 = vmatpush.msra.mxu3 %v70_v29  ;;  %119 = vmatpush.msra.mxu0 %v55_v26 }
  0x25   :  { %290 = vmatpush.msra.mxu2 %v53_v30  ;;  %142 = vmatpush.msra.mxu1 %v71_v27 }
  0x26   :  { %306 = vmatpush.msra.mxu3 %v69_v31  ;;  %120 = vmatpush.msra.mxu0 %v54_v28 }
  0x27   :  { %291 = vmatpush.msra.mxu2 %v52_v32  ;;  %143 = vmatpush.msra.mxu1 %v70_v29 }
  0x28   :  { %307 = vmatpush.msra.mxu3 %v68_v33  ;;  %121 = vmatpush.msra.mxu0 %v53_v30 }
  0x29   :  { %292 = vmatpush.msra.mxu2 %v51_v34  ;;  %144 = vmatpush.msra.mxu1 %v69_v31 }
  0x2a   :  { %308 = vmatpush.msra.mxu3 %v67_v35  ;;  %122 = vmatpush.msra.mxu0 %v52_v32 }
  0x2b   :  { %293 = vmatpush.msra.mxu2 %v50_v36  ;;  %145 = vmatpush.msra.mxu1 %v68_v33 }
  0x2c   :  { %309 = vmatpush.msra.mxu3 %v66_v37  ;;  %123 = vmatpush.msra.mxu0 %v51_v34 }
  0x2d   :  { %146 = vmatpush.msra.mxu1 %v67_v35  ;;  %294 = vmatpush.msra.mxu2 %v49_v38 }
  0x2e   :  { %124 = vmatpush.msra.mxu0 %v50_v36  ;;  %310 = vmatpush.msra.mxu3 %v65_v39 }
  0x2f   :  { %147 = vmatpush.msra.mxu1 %v66_v37  ;;  %322 = vperm.xlu1 %320, %v321_v42  }
  0x30   :  { %125 = vmatpush.msra.mxu0 %v49_v38 }
  0x31   :  { %148 = vmatpush.msra.mxu1 %v65_v39 }
  0x87   :  { %v191_v48 = vpop.xlane.xlu1 %190 }
  0x88   :  { %v192_v49 = vmax.f32 %v191_v48, 1.0 }
  0x8a   :  { %v97_v45 = vpop.permute.xlu0 %96  ;;  %v194_v50 = vrot.slane %v192_v49, 1  ;;  %vm202_vm8 = vweird.f32 %v192_v49  ;;  %v208_v14 = vand.u32 2147483648, %v192_v49  ;;  %v206_v19 = vand.u32 2147483647, %v192_v49 }
  0x8b   :  { %vm100_vm2 = vcmp.eq.s32.totalorder %v97_v45, %v82_v43  ;;  %vm101_vm3 = vcmp.eq.s32.totalorder %v97_v45, %v83_v44 }
  0x8c   :  { %276 = vmatmul.msk.f32.vlgmr.msra.gmra.mxu2 %vm100_vm2, %v439_v46  ;;  %278 = vmatmul.msk.f32.vlgmr.msra.gmra.mxu3 %vm101_vm3, %v439_v46  ;;  %326 = vrcp.f32 %v194_v50  ;;  %vm217_vm6 = vweird.f32 %v194_v50  ;;  %v223_v9 = vand.u32 2147483648, %v194_v50  ;;  %v221_v13 = vand.u32 2147483647, %v194_v50 }
  0x8d   :  { %328 = vrcp.f32 %v192_v49  ;;  %v209_v25 = vor.u32 1.1754944e-38, %v208_v14  ;;  %vm207_vm13 = vcmp.eq.f32.partialorder %v206_v19, 8.507059e+37 }
  0x8e   :  { %v224_v21 = vor.u32 1.1754944e-38, %v223_v9  ;;  %vm222_vm12 = vcmp.eq.f32.partialorder %v221_v13, 8.507059e+37 }
  0x92   :  { %v90_v47 = vpop.permute.xlu0 %89  ;;  %v327_v51 = vpop.eup %326 }
  0x93   :  { %vm98_vm4 = vcmp.eq.s32.totalorder %v90_v47, %v82_v43  ;;  %vm99_vm5 = vcmp.eq.s32.totalorder %v90_v47, %v83_v44  ;;  %v478_v52 = vpop.eup %328  ;;  %v213_v54 = vmul.f32 %v327_v51, %v194_v50  ;;  %vm218_vm7 = vweird.f32 %v327_v51 }
  0x94   :  { %275 = vmatmul.msk.f32.vlgmr.msra.gmra.mxu0 %vm98_vm4, %v439_v46  ;;  %277 = vmatmul.msk.f32.vlgmr.msra.gmra.mxu1 %vm99_vm5, %v439_v46  ;;  %v198_v55 = vmul.f32 %v478_v52, %v192_v49  ;;  %vm203_vm9 = vweird.f32 %v478_v52  ;;  %vm489_vm10 = vmor %vm217_vm6, %vm218_vm7 }
  0x95   :  { %v214_v60 = vsub.f32 1.0, %v213_v54  ;;  %vm494_vm11 = vmor %vm202_vm8, %vm203_vm9 }
  0x96   :  { %v199_v61 = vsub.f32 1.0, %v198_v55 }
  0x97   :  { %v215_v5 = vmul.f32 %v327_v51, %v214_v60 }
  0x98   :  { %v200_v6 = vmul.f32 %v478_v52, %v199_v61 }
  0x99   :  { %v216_v12 = vadd.f32 %v327_v51, %v215_v5 }
  0x9a   :  { %v201_v18 = vadd.f32 %v478_v52, %v200_v6 }
  0x9b   :  { %v220_v24 = vsel %vm489_vm10, %v327_v51, %v216_v12 }
  0x9c   :  { %v205_v28 = vsel %vm494_vm11, %v478_v52, %v201_v18  ;;  %v225_v29 = vsel %vm222_vm12, %v224_v21, %v220_v24 }
  0x9d   :  { %v210_v32 = vsel %vm207_vm13, %v209_v25, %v205_v28 }
  0xa1   :  { %v323_v53 = vpop.permute.xlu1 %322 }
  0xa2   :  { %v324_v56 = vunpack.i.l.bf16 %v323_v53  ;;  %v325_v0 = vunpack.i.h.bf16 %v323_v53 }
 0x10f   :  { %v130_v57 = vpop.f32.mrf.mxu2  ;;  %v153_v58 = vpop.f32.mrf.mxu3 }
 0x110   :  { %v154_v59 = vadd.f32 %v153_v58, %v130_v57 }
 0x111   :  { %v127_v62 = vpop.f32.mrf.mxu0  ;;  %v150_v63 = vpop.f32.mrf.mxu1 }
 0x112   :  { %157 = vst [vmem:[#allocation7 + $0x8] sm:$0xff] %v154_v59  ;;  %v173_v1 = vmul.f32 %v324_v56, %v154_v59  ;;  %v151_v2 = vadd.f32 %v150_v63, %v127_v62 }
 0x114   :  { %v180_v3 = vrot.slane %v173_v1, 4  ;;  %156 = vst [vmem:[#allocation7] sm:$0xff] %v151_v2  ;;  %v172_v4 = vmul.f32 %v325_v0, %v151_v2 }
 0x115   :  { %246 = dma.vmem_to_hbm [thread:$0]  %s239_s1, 256, %s241_s26, [#allocation4], %s436_s22, %s436_s22, %s437_s23  }
 0x116   :  { %v181_v7 = vadd.f32 %v180_v3, %v173_v1  ;;  %v174_v8 = vrot.slane %v172_v4, 4 }
 0x118   :  { %v182_v10 = vrot.slane %v181_v7, 2  ;;  %v175_v11 = vadd.f32 %v174_v8, %v172_v4 }
 0x11a   :  { %v183_v16 = vadd.f32 %v182_v10, %v181_v7  ;;  %v176_v17 = vrot.slane %v175_v11, 2 }
 0x11c   :  { %v184_v22 = vrot.slane %v183_v16, 1  ;;  %v177_v23 = vadd.f32 %v176_v17, %v175_v11 }
 0x11e   :  { %v185_v26 = vadd.f32 %v184_v22, %v183_v16  ;;  %v178_v27 = vrot.slane %v177_v23, 1 }
 0x120   :  { %v179_v30 = vadd.f32 %v178_v27, %v177_v23  ;;  %v226_v31 = vmul.f32 %v225_v29, %v185_v26 }
 0x122   :  { %v211_v33 = vmul.f32 %v210_v32, %v179_v30  ;;  %v229_v34 = vrot.slane %v226_v31, 7 }
 0x124   :  { %v231_v35 = vsel %vm230_vm14, %v229_v34, %v211_v33 }
 0x125   :  { %233 = vst [vmem:[#allocation8] sm:$0x3] %v231_v35 }
 0x126   :  { %257 = dma.vmem_to_hbm [thread:$0]  %s253_s27, 32, %s255_s30, [#allocation9]  }
 0x127   :  { %430 = dma.done.wait [#allocation4], 256  }
 0x128   :  { %431 = vsyncadd [#allocation4], 4294967040 }
 0x129   :  { %432 = dma.done.wait [#allocation9], 32  }
 0x12a   :  { %433 = vsyncadd [#allocation9], 4294967264 }
 0x12b   :  { %266 = vsyncpa [#allocation3], 1 }
 0x12c   :  { %267 = vsyncpa [#allocation6], 1 }
 0x12d   :  { %268 = vsyncpa [#allocation4], 1 }
 0x12e   :  { %269 = vsyncpa [#allocation9], 1 }

</bundles_post_ra>
